<compile_context>
chip_gen: v6e
topology: v6e:2x2x1
jax: 0.10.0
libtpu: 0.0.40
codegen_flags: <defaults>
</compile_context>

<pallas_src>
import functools

import jax
import jax.numpy as jnp
from jax.experimental import pallas as pl
from jax.experimental.pallas import tpu as pltpu

LN_EPS = 1e-5


def _round_up(a: int, b: int) -> int:
    return (a + b - 1) // b * b


def _to_patches_kernel(x_ref, w_ref, params_ref, o_ref, *, valid_dim):
    # Fused Linear (MXU matmul, f32 accumulate) + LayerNorm epilogue (f32 math).
    # Operands are fed in their native dtype (bf16 inputs keep the bf16 MXU
    # path and halve DMA bytes, which is the recommended mode on v5e);
    # preferred_element_type keeps the accumulator in f32.
    y = jnp.dot(x_ref[...], w_ref[...], preferred_element_type=jnp.float32)
    params = params_ref[...].astype(jnp.float32)   # rows: bias, gamma, beta
    y = y + params[0:1, :]

    dim_pad = y.shape[-1]
    inv_d = 1.0 / valid_dim
    # Padded weight/bias columns are exactly zero (guaranteed by the wrapper),
    # so plain sums over the padded width equal sums over the valid columns.
    mean = jnp.sum(y, axis=-1, keepdims=True) * inv_d
    if valid_dim == dim_pad:
        # Exact width: keep the (more stable) centered two-pass form.
        centered = y - mean
        var = jnp.sum(centered * centered, axis=-1, keepdims=True) * inv_d
        yn = centered * jax.lax.rsqrt(var + LN_EPS)
    else:
        # Mask-free variance: padded y columns are exactly zero, so
        # E[y^2] - mean^2 over the padded width is exact and we avoid an
        # iota + compare + select over the whole (TM, dim_pad) tile.  Clamp
        # guards against tiny negative round-off before rsqrt.
        ex2 = jnp.sum(y * y, axis=-1, keepdims=True) * inv_d
        var = jnp.maximum(ex2 - mean * mean, 0.0)
        yn = (y - mean) * jax.lax.rsqrt(var + LN_EPS)
    # Padded gamma/beta columns are zero, so padded output columns stay zero.
    out = yn * params[1:2, :] + params[2:3, :]
    o_ref[...] = out.astype(o_ref.dtype)


def to_patches_pallas(x, weight, bias, gamma, beta, patch_size, *, row_tile=None):
    """x: [B, C, H, W] (NCHW, like PyTorch). weight: [patch_dim, dim]. Returns [B, L, dim]."""
    B, C, H, W = x.shape
    p = patch_size
    assert H % p == 0 and W % p == 0
    hp, wp = H // p, W // p
    L = hp * wp
    patch_dim = C * p * p
    dim = weight.shape[1]

    in_itemsize = jnp.dtype(x.dtype).itemsize

    # Unfold: [B,C,H,W] -> [B*L, C*p*p] with (c, ky, kx) ordering (== F.unfold).
    # allow_input_fusion below lets XLA fold this reshape/transpose (and the
    # pads) into the pallas_call's first operand instead of a separate
    # HBM write+read pass.
    # TODO(synk): a fully implicit in-kernel unfold needs a multi-axis
    # rearrange of (C, p, W) slabs that Mosaic does not lower reliably for
    # these small, non-(8,128)-aligned shapes, so the glue stays here.
    patches = x.reshape(B, C, hp, p, wp, p)
    patches = patches.transpose(0, 2, 4, 1, 3, 5)   # [B, hp, wp, C, p, p]
    patches = patches.reshape(B * L, patch_dim)

    N = B * L

    # Row tile: dtype-aware (large tiles amortize the ~0.35 us per-grid-step
    # overhead; bf16 tiles are half the bytes so go 2x wider), sized to
    # minimize tail padding (TM ~= N / num_steps), and split into >=2 steps
    # so the single "parallel" grid axis can shard across both v7x TCs.
    if row_tile is None:
        row_tile = 2048 if in_itemsize <= 2 else 1024
    num_steps = max(1, -(-N // row_tile))
    if num_steps < 2 and N >= 16:
        num_steps = 2                       # keep both v7x TensorCores busy
    TM = _round_up(-(-N // num_steps), 8)
    n_pad = _round_up(N, TM)
    if n_pad != N:
        patches = jnp.pad(patches, ((0, n_pad - N), (0, 0)))
    grid = n_pad // TM

    # K (patch_dim) alignment: only pad to a 128 multiple when patch_dim is
    # already >128 (e.g. 3*14*14=588 -> 640).  Padding a small K would add
    # real HBM bytes to a memory-bound op, so skip it there (full-dim blocks
    # are still legal).
    k_dim = patch_dim
    if patch_dim > 128 and patch_dim % 128 != 0:
        k_dim = _round_up(patch_dim, 128)
        patches = jnp.pad(patches, ((0, 0), (0, k_dim - patch_dim)))
        weight = jnp.pad(weight, ((0, k_dim - patch_dim), (0, 0)))

    # Lane-dense output: pad the feature dim to a multiple of 128 so output
    # stores are full-width vst.  Padded weight/param columns are exactly
    # zero, which the kernel's mask-free mean/variance path relies on.
    dim_pad = _round_up(dim, 128)
    if dim_pad != dim:
        weight = jnp.pad(weight, ((0, 0), (0, dim_pad - dim)))
        bias = jnp.pad(bias, (0, dim_pad - dim))
        gamma = jnp.pad(gamma, (0, dim_pad - dim))
        beta = jnp.pad(beta, (0, dim_pad - dim))
    # One stacked (3, dim_pad) parameter slab -> one DMA / one VMEM tile
    # instead of three separate operands.
    params = jnp.stack([bias, gamma, beta], axis=0)

    w_itemsize = jnp.dtype(weight.dtype).itemsize
    p_itemsize = jnp.dtype(params.dtype).itemsize

    kernel = functools.partial(_to_patches_kernel, valid_dim=dim)

    # Actual VMEM footprint (double-buffered x/out tiles, weight, params) plus
    # headroom for the f32 epilogue temporaries; never request the whole v7x
    # 64 MiB per-TC VMEM.
    footprint = (2 * TM * k_dim * in_itemsize          # x tiles (2 buffers)
                 + 2 * TM * dim_pad * in_itemsize      # out tiles (2 buffers)
                 + 2 * k_dim * dim_pad * w_itemsize    # grid-invariant weight
                 + 2 * 3 * dim_pad * p_itemsize        # params
                 + 3 * TM * dim_pad * 4)               # f32 epilogue temps
    vmem_limit = min(max(int(footprint * 3 // 2), 16 * 1024 * 1024),
                     48 * 1024 * 1024)

    cost = pl.CostEstimate(
        flops=2 * n_pad * k_dim * dim_pad,
        transcendentals=n_pad,                         # one rsqrt per row
        bytes_accessed=(n_pad * k_dim * in_itemsize
                        + k_dim * dim_pad * w_itemsize
                        + 3 * dim_pad * p_itemsize
                        + n_pad * dim_pad * in_itemsize),
    )

    out = pl.pallas_call(
        kernel,
        out_shape=jax.ShapeDtypeStruct((n_pad, dim_pad), x.dtype),
        grid_spec=pltpu.PrefetchScalarGridSpec(
            num_scalar_prefetch=0,
            grid=(grid,),
            in_specs=[
                pl.BlockSpec((TM, k_dim), lambda i: (i, 0)),
                pl.BlockSpec((k_dim, dim_pad), lambda i: (0, 0)),  # resident weight
                pl.BlockSpec((3, dim_pad), lambda i: (0, 0)),      # bias/gamma/beta
            ],
            out_specs=pl.BlockSpec((TM, dim_pad), lambda i: (i, 0)),
        ),
        compiler_params=pltpu.CompilerParams(
            dimension_semantics=("parallel",),
            vmem_limit_bytes=vmem_limit,
            # Best-effort: allow XLA to fuse the unfold reshape/transpose/pad
            # producer chain into this call's first operand (removes a full
            # HBM write+read of the activation when it lowers; harmless no-op
            # otherwise).  Weight/params stay materialized.
            allow_input_fusion=[True, False, False],
        ),
        cost_estimate=cost,
    )(patches, weight, params)

    return out[:N, :dim].reshape(B, L, dim)


def _reference(x, weight, bias, gamma, beta, patch_size):
    B, C, H, W = x.shape
    p = patch_size
    hp, wp = H // p, W // p
    patches = x.reshape(B, C, hp, p, wp, p).transpose(0, 2, 4, 1, 3, 5)
    patches = patches.reshape(B, hp * wp, C * p * p)
    y = patches @ weight + bias
    mean = jnp.mean(y, axis=-1, keepdims=True)
    var = jnp.mean((y - mean) ** 2, axis=-1, keepdims=True)
    return (y - mean) * jax.lax.rsqrt(var + LN_EPS) * gamma + beta


if __name__ == "__main__":
    key = jax.random.PRNGKey(0)
    B, C, H, W = 2, 4, 16, 16
    patch_size = 4
    dim = 32
    patch_dim = C * patch_size * patch_size  # 64

    k1, k2, k3, k4, k5 = jax.random.split(key, 5)
    x = jax.random.normal(k1, (B, C, H, W), dtype=jnp.float32)
    # Deterministic synthetic parameters (nn.Linear stores [dim, patch_dim];
    # we keep [patch_dim, dim] so the kernel does x @ W directly).
    weight = jax.random.normal(k2, (patch_dim, dim), dtype=jnp.float32) * 0.05
    bias = jax.random.normal(k3, (dim,), dtype=jnp.float32) * 0.01
    gamma = 1.0 + 0.1 * jax.random.normal(k4, (dim,), dtype=jnp.float32)
    beta = 0.05 * jax.random.normal(k5, (dim,), dtype=jnp.float32)

    out = to_patches_pallas(x, weight, bias, gamma, beta, patch_size)
    out = jax.block_until_ready(out)

    ref = _reference(x, weight, bias, gamma, beta, patch_size)
    assert out.shape == (B, (H // patch_size) * (W // patch_size), dim)
    assert jnp.allclose(out, ref, atol=1e-4, rtol=1e-4)
    print("KERNEL_OK")
</pallas_src>

<mosaic_0001>
module attributes {stable_mosaic.version = 11 : i64} {
  func.func @_to_patches_kernel(%arg0: i32, %arg1: memref<16x64xf32, #tpu.memory_space<vmem>>, %arg2: memref<64x128xf32, #tpu.memory_space<vmem>>, %arg3: memref<3x128xf32, #tpu.memory_space<vmem>>, %arg4: memref<16x128xf32, #tpu.memory_space<vmem>>) attributes {dimension_semantics = [#tpu.dimension_semantics<parallel>], iteration_bounds = array<i64: 2>, scalar_prefetch = 0 : i64, scratch_operands = 0 : i64, tpu.core_type = #tpu.core_type<tc>, window_params = [{transform_indices = @transform_0, window_bounds = array<i64: 16, 64>}, {pipeline_mode = #tpu.pipeline_mode<synchronous>, transform_indices = @transform_1, window_bounds = array<i64: 64, 128>}, {pipeline_mode = #tpu.pipeline_mode<synchronous>, transform_indices = @transform_2, window_bounds = array<i64: 3, 128>}, {transform_indices = @transform_3, window_bounds = array<i64: 16, 128>}]} {
    %c0 = arith.constant 0 : index
    %c0_0 = arith.constant 0 : index
    %0 = vector.load %arg1[%c0, %c0_0] : memref<16x64xf32, #tpu.memory_space<vmem>>, vector<16x64xf32>
    %c0_1 = arith.constant 0 : index
    %c0_2 = arith.constant 0 : index
    %1 = vector.load %arg2[%c0_1, %c0_2] : memref<64x128xf32, #tpu.memory_space<vmem>>, vector<64x128xf32>
    %cst = arith.constant dense<0.000000e+00> : vector<16x128xf32>
    %2 = tpu.matmul %0, %1, %cst {dimension_numbers = #tpu.dot_dimension_numbers<[1], [0], [0], [1], [0, 0, 1, 1], [], []>} : vector<16x64xf32>, vector<64x128xf32>, vector<16x128xf32> -> vector<16x128xf32>
    %c0_3 = arith.constant 0 : index
    %c0_4 = arith.constant 0 : index
    %3 = vector.load %arg3[%c0_3, %c0_4] : memref<3x128xf32, #tpu.memory_space<vmem>>, vector<3x128xf32>
    %4 = vector.extract_strided_slice %3 {offsets = [0, 0], sizes = [1, 128], strides = [1, 1]} : vector<3x128xf32> to vector<1x128xf32>
    %5 = vector.broadcast %4 : vector<1x128xf32> to vector<16x128xf32>
    %6 = arith.addf %2, %5 : vector<16x128xf32>
    %cst_5 = arith.constant dense<0.000000e+00> : vector<16xf32>
    %7 = vector.multi_reduction <add>, %6, %cst_5 [1] : vector<16x128xf32> to vector<16xf32>
    %8 = vector.shape_cast %7 : vector<16xf32> to vector<16x1xf32>
    %cst_6 = arith.constant 3.125000e-02 : f32
    %9 = vector.broadcast %cst_6 : f32 to vector<16x1xf32>
    %10 = arith.mulf %8, %9 : vector<16x1xf32>
    %11 = arith.mulf %6, %6 : vector<16x128xf32>
    %cst_7 = arith.constant dense<0.000000e+00> : vector<16xf32>
    %12 = vector.multi_reduction <add>, %11, %cst_7 [1] : vector<16x128xf32> to vector<16xf32>
    %13 = vector.shape_cast %12 : vector<16xf32> to vector<16x1xf32>
    %cst_8 = arith.constant 3.125000e-02 : f32
    %14 = vector.broadcast %cst_8 : f32 to vector<16x1xf32>
    %15 = arith.mulf %13, %14 : vector<16x1xf32>
    %16 = arith.mulf %10, %10 : vector<16x1xf32>
    %17 = arith.subf %15, %16 : vector<16x1xf32>
    %cst_9 = arith.constant 0.000000e+00 : f32
    %18 = vector.broadcast %cst_9 : f32 to vector<16x1xf32>
    %19 = arith.maximumf %17, %18 : vector<16x1xf32>
    %20 = vector.broadcast %10 : vector<16x1xf32> to vector<16x128xf32>
    %21 = arith.subf %6, %20 : vector<16x128xf32>
    %cst_10 = arith.constant 9.99999974E-6 : f32
    %22 = vector.broadcast %cst_10 : f32 to vector<16x1xf32>
    %23 = arith.addf %19, %22 : vector<16x1xf32>
    %24 = math.rsqrt %23 : vector<16x1xf32>
    %25 = vector.broadcast %24 : vector<16x1xf32> to vector<16x128xf32>
    %26 = arith.mulf %21, %25 : vector<16x128xf32>
    %27 = vector.extract_strided_slice %3 {offsets = [1, 0], sizes = [1, 128], strides = [1, 1]} : vector<3x128xf32> to vector<1x128xf32>
    %28 = vector.broadcast %27 : vector<1x128xf32> to vector<16x128xf32>
    %29 = arith.mulf %26, %28 : vector<16x128xf32>
    %30 = vector.extract_strided_slice %3 {offsets = [2, 0], sizes = [1, 128], strides = [1, 1]} : vector<3x128xf32> to vector<1x128xf32>
    %31 = vector.broadcast %30 : vector<1x128xf32> to vector<16x128xf32>
    %32 = arith.addf %29, %31 : vector<16x128xf32>
    %c0_11 = arith.constant 0 : index
    %c0_12 = arith.constant 0 : index
    %33 = vector.load %arg4[%c0_11, %c0_12] : memref<16x128xf32, #tpu.memory_space<vmem>>, vector<16x128xf32>
    tpu.vector_store %arg4[%c0_11, %c0_12], %32 {strides = array<i32>} : memref<16x128xf32, #tpu.memory_space<vmem>>, vector<16x128xf32>,
    return
  }
  func.func @transform_0(%arg0: i32) -> (i32, i32) {
    %c0_i32 = arith.constant 0 : i32
    %c0_i32_0 = arith.constant 0 : i32
    return %arg0, %c0_i32 : i32, i32
  }
  func.func @transform_1(%arg0: i32) -> (i32, i32) {
    %c0_i32 = arith.constant 0 : i32
    %c0_i32_0 = arith.constant 0 : i32
    %c0_i32_1 = arith.constant 0 : i32
    return %c0_i32, %c0_i32_0 : i32, i32
  }
  func.func @transform_2(%arg0: i32) -> (i32, i32) {
    %c0_i32 = arith.constant 0 : i32
    %c0_i32_0 = arith.constant 0 : i32
    %c0_i32_1 = arith.constant 0 : i32
    return %c0_i32, %c0_i32_0 : i32, i32
  }
  func.func @transform_3(%arg0: i32) -> (i32, i32) {
    %c0_i32 = arith.constant 0 : i32
    %c0_i32_0 = arith.constant 0 : i32
    return %arg0, %c0_i32 : i32, i32
  }
}

</mosaic_0001>

<bundles_post_ra>
// kernel: tpu_custom_call.1
= control target key start
LH: loop header
LB: loop body
LE: loop exit
PB: predicated region body
PF: predicated region fallthrough
CT: control target
= control target key end

     0   :  { %8 = vsyncpa [#allocation3], 0  ;;  %s967_s0 = inlined_call_operand.hbm [shape: f32[32,64], index: 0, kind: input, shape index: {}]   ;;  %s968_s1 = inlined_call_operand.hbm [shape: f32[64,128], index: 1, kind: input, shape index: {}]   ;;  %s969_s2 = inlined_call_operand.hbm [shape: f32[3,128], index: 2, kind: input, shape index: {}]   ;;  %s970_s3 = inlined_call_operand.hbm [shape: f32[32,128], index: 3, kind: output, shape index: {}]  }
   0x1   :  { %10 = vsyncpa [#allocation3 + $0x1], 0 }
   0x2   :  { %11 = vsyncpa [#allocation6], 0 }
   0x3   :  { %12 = vsyncpa [#allocation4], 0 }
   0x4   :  { %14 = vsyncpa [#allocation4 + $0x1], 0  ;;  %s767_s12 = smov 0   ;;  %s769_s13 = smov 0  }
   0x5   :  { %s771_s14 = smov 0   ;;  %s773_s15 = smov 0  }
   0x6 LB: > { %s788_s16 = sadd.s32 4294967295, %s737_s15   ;;  %s463_s17 = sadd.s32 4294967294, %s737_s15   ;;  %s737_s15 = sphi %s773_s15, %s991_s15   ;;  %s733_s14 = sphi %s771_s14, %s990_s14   ;;  %s729_s13 = sphi %s769_s13, %s989_s13   ;;  %s725_s12 = sphi %s767_s12, %s988_s12  }
   0x7   : > { %p40_p0 = scmp.ne.s32.totalorder %s729_s13, %s725_s12  ;;  %p971_p1 = scmp.eq.s32.totalorder %s788_s16, 0 }
   0x8   : > { %p106_p2 = scmp.eq.s32.totalorder %s788_s16, 1  ;;  %p112_p3 = scmp.eq.s32.totalorder %s463_s17, 1 }
   0x9   : > { %p797_p4 = por %p971_p1, %p40_p0  ;;  %p464_p5 = scmp.ge.s32.totalorder %s737_s15, 1 }
   0xa   : > { %p802_p6 = por %p112_p3, %p40_p0  ;;  %p119_p7 = scmp.lt.s32.totalorder %s737_s15, 3 }
   0xb   : > { %s975_s18 = scalar_select %p797_p4, 1, 0 }
   0xc   : > { %s976_s19 = scalar_select %p802_p6, 1, 0 }
   0xd   : > { %p807_p8 = pnand %p464_p5, %p119_p7  ;;  %s739_s21 = smov [#allocation5]  }
   0xe   : > { %s131_s22 = sshll.u32 %s739_s21, 4  ;;  %s740_s24 = smov [#allocation7]   ;;  %s132_s22 = int_to_ptr.vmem [resolvable:$true] %s131_s22 }
   0xf   : > { %s977_s20 = scalar_select %p807_p8, 1, 0 }
  0x10   : > { %p526_p9 = pneg %p807_p8  ;;  %s145_s25 = sshll.u32 %s740_s24, 4  ;;  %s146_s25 = int_to_ptr.vmem [resolvable:$true] %s145_s25 }
  0x11   : > { %s600_s26 = scalar_lea.vmem %s132_s22, 1024  ;;  %p608_p5 = scmp.lt.s32.totalorder %s132_s22, %s132_s22 }
  0x12   : > { %p816_p11 = pnand %p526_p9, %p971_p1  ;;  %p601_p13 = scmp.ne.s32.totalorder %s132_s22, %s600_s26 }
  0x13   : > { %p609_p7 = scmp.lt.s32.totalorder %s600_s26, %s600_s26 }
  0x14   : > { %p591_p12 = pneg %p816_p11 }
  0x15   : > { %p610_p10 = por %p609_p7, %p608_p5 }
  0x16   : > { %p603_p0 = pnand %p601_p13, %p591_p12 }
  0x18   : > { %p604_p3 = pneg %p603_p0 }
  0x1a   : > { %p611_p9 = pnand %p610_p10, %p604_p3 }
  0x1c   : > { %614 = shalt.err (!%p611_p9)
}
  0x1d   : > { %s741_s27 = smov 128   ;;  %s742_s28 = smov 8  }
  0x1e   : > { %529 = dma.hbm_to_vmem [thread:$0]  (!%p816_p11), %s968_s1, 1024, %s132_s22, [#allocation6], %s741_s27, %s741_s27, %s742_s28  }
  0x1f   : > { %s626_s4 = scalar_lea.vmem %s146_s25, 64  ;;  %p634_p10 = scmp.lt.s32.totalorder %s146_s25, %s146_s25 }
  0x20   : > { %p627_p13 = scmp.ne.s32.totalorder %s146_s25, %s626_s4  ;;  %p635_p3 = scmp.lt.s32.totalorder %s626_s4, %s626_s4 }
  0x22   : > { %p629_p0 = pnand %p627_p13, %p591_p12  ;;  %p636_p7 = por %p635_p3, %p634_p10 }
  0x24   : > { %p630_p5 = pneg %p629_p0 }
  0x26   : > { %p637_p9 = pnand %p636_p7, %p630_p5 }
  0x28   : > { %640 = shalt.err (!%p637_p9)
}
  0x29   : > { %532 = dma.hbm_to_vmem [thread:$0]  (!%p816_p11), %s969_s2, 64, %s146_s25, [#allocation6]  }
  0x2a   : > { %s842_s7 = sadd.s32 1, %s737_s15   ;;  %s27_s8 = sadd.s32 1, %s733_s14 }
  0x2b   : > { %s24_s9 = ssub.s32 %s737_s15, %s842_s7  ;;  %p34_p12 = scmp.ne.s32.totalorder %s733_s14, %s729_s13 }
  0x2c   : > { %p25_p13 = scmp.eq.s32.totalorder %s24_s9, 0  ;;  %p35_p0 = scmp.eq.s32.totalorder %s737_s15, 0 }
  0x2d   : > { %p852_p5 = por %p106_p2, %p34_p12  ;;  %p543_p10 = scmp.lt.s32.totalorder %s737_s15, 2 }
  0x2e   : > { %s858_s11 = scalar_select %p25_p13, %s733_s14, %s27_s8  }
  0x2f   : > { %s979_s10 = scalar_select %p852_p5, 1, 0 }
  0x30   : > { %p36_p3 = por %p35_p0, %p34_p12  ;;  %s156_s17 = sand.u32 1, %s733_s14  }
  0x31   : > { %s468_s21 = sshll.u32 %s156_s17, 4  ;;  %s483_s22 = sshll.u32 %s737_s15, 8 }
  0x32   : > { %s865_s25 = scalar_lea.hbm %s967_s0, %s483_s22  ;;  %s160_s26 = scalar_lea.vmem [#allocation2], %s468_s21 }
  0x33   : > { %s167_s29 = sshll.u32 %s160_s26, 4  ;;  %p869_p2 = pnand %p543_p10, %p36_p3  ;;  %s867_s29 = int_to_ptr.vmem [resolvable:$true] %s167_s29 }
  0x34   : > { %s873_s4 = scalar_lea.sflag [#allocation3], %s156_s17  ;;  %s641_s5 = scalar_lea.hbm %s865_s25, 256 }
  0x35   : > { %p642_p11 = scmp.ne.s32.totalorder %s865_s25, %s641_s5  ;;  %p643_p7 = pneg %p869_p2 }
  0x36   : > { %s646_s9 = scalar_lea.hbm %s967_s0, 512  ;;  %p647_p13 = scmp.lt.s32.totalorder %s865_s25, %s967_s0 }
  0x37   : > { %p644_p9 = pnand %p643_p7, %p642_p11  ;;  %p648_p0 = scmp.lt.s32.totalorder %s646_s9, %s641_s5 }
  0x39   : > { %p645_p12 = pneg %p644_p9  ;;  %p649_p10 = por %p648_p0, %p647_p13 }
  0x3b   : > { %p650_p3 = pnand %p649_p10, %p645_p12 }
  0x3d   : > { %653 = shalt.err (!%p650_p3)
}
  0x3e   : > { %s654_s17 = scalar_lea.vmem %s867_s29, 256  ;;  %s743_s23 = smov [#allocation2]  }
  0x3f   : > { %p655_p1 = scmp.ne.s32.totalorder %s867_s29, %s654_s17  ;;  %s659_s24 = sshll.u32 %s743_s23, 4  ;;  %s660_s24 = int_to_ptr.vmem [resolvable:$false] %s659_s24 }
  0x40   : > { %s661_s26 = scalar_lea.vmem %s660_s24, 512  ;;  %p662_p9 = scmp.lt.s32.totalorder %s867_s29, %s660_s24 }
  0x41   : > { %p657_p6 = pnand %p655_p1, %p643_p7  ;;  %p663_p5 = scmp.lt.s32.totalorder %s661_s26, %s654_s17 }
  0x43   : > { %p658_p11 = pneg %p657_p6  ;;  %p664_p4 = por %p663_p5, %p662_p9 }
  0x45   : > { %p665_p8 = pnand %p664_p4, %p658_p11 }
  0x47   : > { %668 = shalt.err (!%p665_p8)
}
  0x48   : > { %536 = dma.hbm_to_vmem [thread:$0]  (!%p869_p2), %s865_s25, 256, %s867_s29, %s873_s4, %s741_s27, %s741_s27, %s742_s28  }
  0x49   : > { %p981_p1 = scmp.ne.s32.totalorder %s977_s20, 0 }
  0x4a   : > { %s900_s5 = sand.u32 (!%p981_p1), 1, %s729_s13   ;;  %p982_p4 = scmp.ne.s32.totalorder (!%p981_p1), %s975_s18, 0 }
  0x4b   : > { %179 = sbr.rel (%p981_p1) target bundleno = 484 (0x1e4), region = 32  ;;  %s472_s6 = sshll.u32 (!%p981_p1), %s900_s5, 4 }
  0x4c   : > { %s182_s8 = scalar_lea.sflag (!%p981_p1), [#allocation3], %s900_s5  ;;  %s185_s30 = scalar_lea.vmem (!%p981_p1), [#allocation2], %s472_s6 }
  0x50   : > { %712 = dma.done.wait (%p982_p4), %s182_s8, 256  }
  0x51   : > { %714 = vsyncadd (%p982_p4), %s182_s8, 4294967040  ;;  %p983_p6 = scmp.eq.s32.totalorder %s788_s16, 0 }
  0x53   : > { %716 = dma.done.wait (%p983_p6), [#allocation6], 1088   ;;  %p984_p8 = pmov %p983_p6 }
  0x54   : > { %v227_v0 = vld [vmem:[#allocation5 + $0x38] sm:$0xff]  ;;  %v226_v1 = vld [vmem:[#allocation5 + $0x30] sm:$0xff]  ;;  %vm233_vm0 = vcmask 523264   ;;  %v225_v2 = vld [vmem:[#allocation5 + $0x28] sm:$0xff]  ;;  %v229_v10 = vlaneseq  ;;  %s484_s18 = sshll.u32 %s788_s16, 8  ;;  %s215_s20 = scalar_lea.vmem [#allocation8], %s472_s6 }
  0x55   : > { %718 = vsyncadd (%p984_p8), [#allocation6], 4294966208  ;;  %495 = vmatprep.subr.mxu0 %v227_v0  ;;  %v218_v3 = vld [vmem:[%s185_s30] sm:$0xff]  ;;  %v223_v5 = vld [vmem:[#allocation5 + $0x18] sm:$0xff]  ;;  %s371_s27 = sshll.u32 %s215_s20, 4  ;;  %s922_s29 = scalar_lea.hbm %s970_s3, %s484_s18  ;;  %s924_s27 = int_to_ptr.vmem [resolvable:$true] %s371_s27 }
  0x56   : > { %496 = vmatpush3.msra.mxu0 %v227_v0  ;;  %511 = vmatprep.mubr.msk.f32.mxu0 %vm233_vm0, %v218_v3  ;;  %v224_v4 = vld [vmem:[#allocation5 + $0x20] sm:$0xff]  ;;  %v222_v6 = vld [vmem:[#allocation5 + $0x10] sm:$0xff]  ;;  %v221_v7 = vld [vmem:[#allocation5 + $0x8] sm:$0xff]  ;;  %v230_v11 = vshrl.u32 %v229_v10, 7  ;;  %s358_s4 = scalar_lea.sflag [#allocation4], %s900_s5  ;;  %s669_s9 = scalar_lea.vmem %s924_s27, 256 }
  0x57   : > { %497 = vmatprep.subr.mxu0 %v226_v1  ;;  %v220_v8 = vld [vmem:[#allocation5] sm:$0xff]  ;;  %v219_v9 = vld [vmem:[%s185_s30 + $0x8] sm:$0xff]  ;;  %p670_p5 = scmp.ne.s32.totalorder %s924_s27, %s669_s9  ;;  %p985_p2 = scmp.ne.s32.totalorder %s979_s10, 0 }
  0x58   : > { %498 = vmatpush3.msra.mxu0 %v226_v1  ;;  %v231_v12 = vsub.s32 0, %v230_v11  ;;  %v228_v13 = vld [vmem:[#allocation7] sm:$0x7]  ;;  %v345_v37 = vsub.s32 1, %v230_v11  ;;  %v351_v38 = vsub.s32 2, %v230_v11  ;;  %s744_s16 = smov [#allocation8]  }
  0x59   : > { %499 = vmatprep.subr.mxu0 %v225_v2  ;;  %p671_p7 = pnand %p670_p5, %p985_p2  ;;  %s673_s21 = sshll.u32 %s744_s16, 4  ;;  %s674_s21 = int_to_ptr.vmem [resolvable:$false] %s673_s21 }
  0x5a   : > { %500 = vmatpush3.msra.mxu0 %v225_v2  ;;  %v232_v15 = vrot.slane %v228_v13, %v231_v12  ;;  %v346_v39 = vrot.slane %v228_v13, %v345_v37  ;;  %v352_v42 = vrot.slane %v228_v13, %v351_v38  ;;  %s675_s22 = scalar_lea.vmem %s674_s21, 512  ;;  %p676_p13 = scmp.lt.s32.totalorder %s924_s27, %s674_s21 }
  0x5b   : > { %501 = vmatprep.subr.mxu0 %v224_v4  ;;  %p672_p12 = pneg %p671_p7  ;;  %p677_p0 = scmp.lt.s32.totalorder %s675_s22, %s669_s9 }
  0x5c   : > { %502 = vmatpush3.msra.mxu0 %v224_v4 }
  0x5d   : > { %503 = vmatprep.subr.mxu0 %v223_v5  ;;  %p678_p10 = por %p677_p0, %p676_p13 }
  0x5e   : > { %504 = vmatpush3.msra.mxu0 %v223_v5 }
  0x5f   : > { %505 = vmatprep.subr.mxu0 %v222_v6  ;;  %p679_p3 = pnand %p678_p10, %p672_p12 }
  0x60   : > { %506 = vmatpush3.msra.mxu0 %v222_v6 }
  0x61   : > { %507 = vmatprep.subr.mxu0 %v221_v7 }
  0x62   : > { %508 = vmatpush3.msra.mxu0 %v221_v7 }
  0x63   : > { %509 = vmatprep.subr.mxu0 %v220_v8 }
  0x64   : > { %510 = vmatpush3.msra.mxu0 %v220_v8 }
  0x65   : > { %512 = vmatmul.mubr.msk.f32.vlgmr.msra.gmra.mxu0 %vm233_vm0, %v219_v9 }
 0x125   : > { %v513_v14 = vpop.f32.mrf.mxu0 }
 0x126   : > { %v312_v18 = vadd.f32 %v513_v14, %v232_v15 }
 0x127   : > { %v306_v16 = vpop.f32.mrf.mxu0 }
 0x128   : > { %v307_v17 = vadd.f32 %v306_v16, %v232_v15  ;;  %v322_v20 = vmul.f32 %v312_v18, %v312_v18 }
 0x12a   : > { %315 = vadd.xlane.f32.xlu0 %v307_v17  ;;  %v321_v19 = vmul.f32 %v307_v17, %v307_v17 }
 0x12c   : > { %323 = vadd.xlane.f32.xlu1 %v321_v19 }
 0x12e   : > { %317 = vadd.xlane.f32.xlu0 %v312_v18 }
 0x130   : > { %325 = vadd.xlane.f32.xlu1 %v322_v20 }
 0x1b3   : > { %v316_v21 = vpop.xlane.xlu0 %315 }
 0x1b4   : > { %v319_v22 = vmul.f32 0.03125, %v316_v21 }
 0x1b5   : > { %v324_v23 = vpop.xlane.xlu1 %323 }
 0x1b6   : > { %v329_v24 = vmul.f32 %v319_v22, %v319_v22  ;;  %v327_v25 = vmul.f32 0.03125, %v324_v23  ;;  %v335_v40 = vsub.f32 %v307_v17, %v319_v22 }
 0x1b7   : > { %v318_v26 = vpop.xlane.xlu0 %317 }
 0x1b8   : > { %v331_v27 = vsub.f32 %v327_v25, %v329_v24  ;;  %v320_v28 = vmul.f32 0.03125, %v318_v26 }
 0x1b9   : > { %v326_v29 = vpop.xlane.xlu1 %325 }
 0x1ba   : > { %v333_v30 = vmax.f32 %v331_v27, 0.0  ;;  %v330_v31 = vmul.f32 %v320_v28, %v320_v28  ;;  %v328_v32 = vmul.f32 0.03125, %v326_v29  ;;  %v336_v45 = vsub.f32 %v312_v18, %v320_v28 }
 0x1bc   : > { %v337_v33 = vadd.f32 1e-05, %v333_v30  ;;  %v332_v34 = vsub.f32 %v328_v32, %v330_v31 }
 0x1be   : > { %585 = vrsqrt.f32 %v337_v33  ;;  %v334_v35 = vmax.f32 %v332_v34, 0.0 }
 0x1c0   : > { %v338_v36 = vadd.f32 1e-05, %v334_v35 }
 0x1c2   : > { %587 = vrsqrt.f32 %v338_v36 }
 0x1cb   : > { %v586_v41 = vpop.eup %585 }
 0x1cc   : > { %v341_v43 = vmul.f32 %v586_v41, %v335_v40 }
 0x1ce   : > { %v347_v44 = vmul.f32 %v346_v39, %v341_v43 }
 0x1cf   : > { %v588_v46 = vpop.eup %587 }
 0x1d0   : > { %v342_v47 = vmul.f32 %v588_v46, %v336_v45  ;;  %v353_v48 = vadd.f32 %v352_v42, %v347_v44 }
 0x1d2   : > { %v348_v49 = vmul.f32 %v346_v39, %v342_v47  ;;  %355 = vst [vmem:[%s215_s20] sm:$0xff] %v353_v48 }
 0x1d4   : > { %v354_v50 = vadd.f32 %v352_v42, %v348_v49 }
 0x1d6   : > { %356 = vst [vmem:[%s215_s20 + $0x8] sm:$0xff] %v354_v50 }
 0x1d7   : > { %682 = shalt.err (!%p679_p3)
}
 0x1d8   : > { %s683_s17 = scalar_lea.hbm %s922_s29, 256  ;;  %s687_s26 = scalar_lea.hbm %s970_s3, 512 }
 0x1d9   : > { %p684_p11 = scmp.ne.s32.totalorder %s922_s29, %s683_s17  ;;  %p688_p4 = scmp.lt.s32.totalorder %s922_s29, %s970_s3 }
 0x1da   : > { %p689_p6 = scmp.lt.s32.totalorder %s687_s26, %s683_s17 }
 0x1db   : > { %p685_p9 = pnand %p684_p11, %p985_p2 }
 0x1dc   : > { %p690_p8 = por %p689_p6, %p688_p4 }
 0x1dd   : > { %p686_p1 = pneg %p685_p9 }
 0x1df   : > { %p691_p5 = pnand %p690_p8, %p686_p1 }
 0x1e1   : > { %694 = shalt.err (!%p691_p5)
}
 0x1e2   : > { %s745_s30 = smov 128   ;;  %s746_s18 = smov 8  }
 0x1e3   : > { %524 = dma.vmem_to_hbm [thread:$0]  (%p985_p2), %s924_s27, 256, %s922_s29, %s358_s4, %s745_s30, %s745_s30, %s746_s18  }
 0x1e4 PF: > { %s386_s20 = sand.u32 1, %s725_s12   ;;  %p986_p7 = scmp.ne.s32.totalorder %s976_s19, 0 }
 0x1e5   : > { %p987_p12 = scmp.ge.s32.totalorder %s737_s15, 2  ;;  %s387_s28 = scalar_lea.sflag [#allocation4], %s386_s20 }
 0x1e7   : > { %p538_p13 = pnand %p987_p12, %p986_p7 }
 0x1e9   : > { %p539_p0 = pneg %p538_p13 }
 0x1eb   : > { %720 = dma.done.wait (%p539_p0), %s387_s28, 256  }
 0x1ec   : > { %722 = vsyncadd (%p539_p0), %s387_s28, 4294967040  ;;  %p17_p10 = scmp.ge.s32.totalorder %s842_s7, 4   ;;  %s988_s12 = smov %s729_s13 }
 0x1ed   : > { %s989_s13 = smov %s733_s14  ;;  %s990_s14 = smov %s858_s11 }
 0x1ee   : > { %s991_s15 = smov %s842_s7  ;;  %19 = sbr.rel (!%p17_p10) target bundleno = 6 (0x6), region = 85 }
 0x1f3   :  { %392 = vsyncpa [#allocation3], 1 }
 0x1f4   :  { %394 = vsyncpa [#allocation3 + $0x1], 1 }
 0x1f5   :  { %395 = vsyncpa [#allocation6], 1 }
 0x1f6   :  { %396 = vsyncpa [#allocation4], 1 }
 0x1f7   :  { %398 = vsyncpa [#allocation4 + $0x1], 1 }

</bundles_post_ra>
